<compile_context>
chip_gen: v6e
topology: v6e:2x2x1
jax: 0.10.0
libtpu: 0.0.40
codegen_flags: <defaults>
</compile_context>

<pallas_src>
import functools
import math

import numpy as np
import jax
import jax.numpy as jnp
from jax import lax
from jax.experimental import pallas as pl
from jax.experimental.pallas import tpu as pltpu

_LANES = 128
_TARGET_BLOCK_BYTES = 2 << 20     # ~2 MiB block -> ~86% of HBM roofline, VMEM-safe everywhere
_MIN_GRID_FOR_SPLIT = 8           # keep "parallel" axis long enough for v7x's 2 TCs
_SMALL_BYPASS_ELEMS = 65536       # below this, plain XLA wins over pallas_call plumbing


def _round_up(x, k):
    return ((x + k - 1) // k) * k


def _apply_power(y, power):
    """y ** power with compile-time fast paths (power is a Python float)."""
    p = float(power)
    if p == 1.0:
        return y
    if p.is_integer():
        # Exact repeated-multiply path (also matches torch.pow for negative bases).
        return lax.integer_pow(y, int(p))
    if (2.0 * p).is_integer():
        # Half-integer: y**p = y**floor(p) * sqrt(y)  (VPU multiplies + one EUP sqrt).
        n = int(math.floor(p))
        r = jnp.sqrt(y)
        return r if n == 0 else lax.integer_pow(y, n) * r
    return jnp.power(y, p)


# ---------------------------------------------------------------------------
# Kernels (flat lane-dense (rows, 128) layout for both paths)
# ---------------------------------------------------------------------------

def _power_all_kernel(y_ref, o_ref, *, power):
    y = y_ref[...].astype(jnp.float32)
    o_ref[...] = _apply_power(y, power).astype(o_ref.dtype)


def _power_masked_kernel(y_ref, o_ref, *, power, idcs, m, tile_rows):
    """Transform only output columns in `idcs`; column id recovered from flat index."""
    y = y_ref[...].astype(jnp.float32)
    y_pow = _apply_power(y, power)

    lane = lax.broadcasted_iota(jnp.int32, y.shape, 1)
    if _LANES % m == 0:
        # column pattern repeats every m lanes, independent of the row
        col = lane % m
    else:
        row = lax.broadcasted_iota(jnp.int32, y.shape, 0)
        row_g = pl.program_id(0) * tile_rows + row          # global flat row
        # (row_g*128 + lane) % m  ==  ((row_g % m)*(128 % m) + lane) % m  (no overflow)
        col = ((row_g % m) * (_LANES % m) + lane) % m

    mask = functools.reduce(jnp.logical_or, [col == i for i in idcs])
    o_ref[...] = jnp.where(mask, y_pow, y).astype(o_ref.dtype)


# ---------------------------------------------------------------------------
# Wrapper
# ---------------------------------------------------------------------------

def _power_xla(Y, power, idcs, m):
    """Plain-XLA fallback for tiny tensors."""
    y_pow = _apply_power(Y.astype(jnp.float32), power).astype(Y.dtype)
    if idcs is None:
        return y_pow
    col_mask = np.zeros((m,), dtype=bool)
    col_mask[list(idcs)] = True
    return jnp.where(jnp.asarray(col_mask), y_pow, Y)


def power_transform(Y, power, outputs=None, *, force_pallas=False):
    """Pallas implementation of Power.forward applied to Y."""
    orig_shape = Y.shape
    m = int(orig_shape[-1]) if len(orig_shape) else 1
    n_elems = int(np.prod(orig_shape)) if len(orig_shape) else 1
    if n_elems == 0:
        return Y

    idcs = None
    if outputs is not None:
        idcs = sorted({int(i) % m for i in outputs})
        if len(idcs) == 0:
            return Y                      # nothing to transform
        if len(idcs) == m:
            idcs = None                   # all columns == outputs-is-None fast path

    # Small-tensor bypass: pallas_call launch + pad/reshape plumbing dominates.
    if not force_pallas and n_elems < _SMALL_BYPASS_ELEMS:
        return _power_xla(Y, power, idcs, m)

    itemsize = jnp.dtype(Y.dtype).itemsize
    sublane_mult = 8 * max(1, 4 // itemsize)   # 8 (f32), 16 (bf16/f16), 32 (int8/fp8)

    # Flat lane-dense view: pad only to the next multiple of 128 if needed.
    flat = Y.reshape(-1)
    total_rows = pl.cdiv(n_elems, _LANES)
    padded_elems = total_rows * _LANES
    if padded_elems != n_elems:
        # constant 1 is safe under negative / fractional exponents (no inf/NaN)
        flat = jnp.pad(flat, (0, padded_elems - n_elems), constant_values=1)
    y2 = flat.reshape(total_rows, _LANES)

    # Tile selection: ~2 MiB blocks; ragged last block handled by Pallas.
    target_rows = max(sublane_mult,
                      _round_up((_TARGET_BLOCK_BYTES // itemsize) // _LANES, sublane_mult))
    if total_rows <= target_rows:
        tile_rows = total_rows            # single full-array block (always layout-legal)
        grid = 1
    else:
        tile_rows = target_rows
        grid = pl.cdiv(total_rows, tile_rows)
        # v7x megacore balance: avoid a short "parallel" grid that strands one TC.
        if grid < _MIN_GRID_FOR_SPLIT:
            tile_rows = max(sublane_mult,
                            _round_up(pl.cdiv(total_rows, _MIN_GRID_FOR_SPLIT), sublane_mult))
            grid = pl.cdiv(total_rows, tile_rows)

    if idcs is None:
        kern = functools.partial(_power_all_kernel, power=power)
    else:
        kern = functools.partial(_power_masked_kernel, power=power,
                                 idcs=tuple(idcs), m=m, tile_rows=tile_rows)

    out = pl.pallas_call(
        kern,
        out_shape=jax.ShapeDtypeStruct((total_rows, _LANES), Y.dtype),
        grid=(grid,),
        in_specs=[pl.BlockSpec((tile_rows, _LANES), lambda i: (i, 0))],
        out_specs=pl.BlockSpec((tile_rows, _LANES), lambda i: (i, 0)),
        compiler_params=pltpu.CompilerParams(
            dimension_semantics=("parallel",),
            vmem_limit_bytes=32 << 20),
    )(y2)

    if padded_elems != n_elems:
        return out.reshape(-1)[:n_elems].reshape(orig_shape)
    return out.reshape(orig_shape)


def power_forward(Y, power, outputs=None, Yvar=None, X=None, *, force_pallas=False):
    """Mirrors Power.forward: returns (Y_tf, Yvar)."""
    if Yvar is not None:
        # TODO(synk): Power does not support transforming observation noise (matches reference).
        raise NotImplementedError("Power does not yet support transforming observation noise")
    return power_transform(Y, power, outputs, force_pallas=force_pallas), Yvar


if __name__ == "__main__":
    key = jax.random.PRNGKey(0)
    batch, n, m = 2, 8, 4
    # Positive targets (non-integer power is only real-valued for positive bases).
    Y = jax.random.uniform(key, (batch, n, m), dtype=jnp.float32,
                           minval=0.5, maxval=2.0)

    # 1) outputs-subset path through the Pallas masked kernel (flat layout + in-kernel mask).
    power = 2.5
    outputs = [0, 2]
    Y_tf, _ = power_forward(Y, power=power, outputs=outputs, force_pallas=True)
    Y_tf = jax.block_until_ready(Y_tf)
    ref_pow = jnp.power(Y, power)
    col_mask = jnp.zeros((m,), dtype=bool).at[jnp.array(outputs)].set(True)
    ref = jnp.where(col_mask, ref_pow, Y)
    assert jnp.allclose(Y_tf, ref, rtol=1e-5, atol=1e-5), "mismatch (outputs subset)"

    # 2) all-outputs path, generic (non-special) exponent, 128-divisible size (no padding).
    Y2 = jax.random.uniform(jax.random.PRNGKey(1), (2, 256, 4), dtype=jnp.float32,
                            minval=0.5, maxval=2.0)
    Y2_tf, _ = power_forward(Y2, power=1.7, force_pallas=True)
    Y2_tf = jax.block_until_ready(Y2_tf)
    assert jnp.allclose(Y2_tf, jnp.power(Y2, 1.7), rtol=1e-5, atol=1e-5), "mismatch (all outputs)"

    # 3) integer-power fast path (valid for negative bases too).
    Y_neg = Y - 1.0
    Y3_tf, _ = power_forward(Y_neg, power=3.0, force_pallas=True)
    Y3_tf = jax.block_until_ready(Y3_tf)
    assert jnp.allclose(Y3_tf, Y_neg ** 3, rtol=1e-5, atol=1e-5), "mismatch (integer power)"

    # 4) small-tensor auto-bypass (plain XLA path).
    Y4_tf, _ = power_forward(Y, power=2.0)
    Y4_tf = jax.block_until_ready(Y4_tf)
    assert jnp.allclose(Y4_tf, Y ** 2, rtol=1e-5, atol=1e-5), "mismatch (XLA bypass)"

    print("KERNEL_OK")
</pallas_src>

<mosaic_0001>
module attributes {stable_mosaic.version = 11 : i64} {
  func.func @_power_masked_kernel(%arg0: i32, %arg1: memref<1x128xf32, #tpu.memory_space<vmem>>, %arg2: memref<1x128xf32, #tpu.memory_space<vmem>>) attributes {dimension_semantics = [#tpu.dimension_semantics<parallel>], iteration_bounds = array<i64: 1>, scalar_prefetch = 0 : i64, scratch_operands = 0 : i64, tpu.core_type = #tpu.core_type<tc>, window_params = [{transform_indices = @transform_0, window_bounds = array<i64: 1, 128>}, {transform_indices = @transform_1, window_bounds = array<i64: 1, 128>}]} {
    %c0 = arith.constant 0 : index
    %c0_0 = arith.constant 0 : index
    %0 = vector.load %arg1[%c0, %c0_0] : memref<1x128xf32, #tpu.memory_space<vmem>>, vector<1x128xf32>
    %1 = math.sqrt %0 : vector<1x128xf32>
    %2 = arith.mulf %0, %0 : vector<1x128xf32>
    %3 = arith.mulf %2, %1 : vector<1x128xf32>
    %4 = tpu.iota {dimensions = array<i32: 1>} : vector<1x128xi32>
    %c4_i32 = arith.constant 4 : i32
    %c0_i32 = arith.constant 0 : i32
    %5 = arith.cmpi eq, %c4_i32, %c0_i32 : i32
    %c1_i32 = arith.constant 1 : i32
    %6 = arith.select %5, %c1_i32, %c4_i32 : i32
    %7 = vector.broadcast %6 : i32 to vector<1x128xi32>
    %8 = arith.remsi %4, %7 : vector<1x128xi32>
    %c0_i32_1 = arith.constant 0 : i32
    %9 = vector.broadcast %c0_i32_1 : i32 to vector<1x128xi32>
    %10 = arith.cmpi ne, %8, %9 : vector<1x128xi32>
    %c0_i32_2 = arith.constant 0 : i32
    %11 = vector.broadcast %c0_i32_2 : i32 to vector<1x128xi32>
    %12 = arith.cmpi slt, %8, %11 : vector<1x128xi32>
    %c0_i32_3 = arith.constant 0 : i32
    %13 = arith.cmpi slt, %6, %c0_i32_3 : i32
    %14 = vector.broadcast %13 : i1 to vector<1x128xi1>
    %15 = vector.broadcast %14 : vector<1x128xi1> to vector<1x128xi1>
    %16 = arith.xori %12, %15 : vector<1x128xi1>
    %17 = arith.andi %16, %10 : vector<1x128xi1>
    %18 = vector.broadcast %6 : i32 to vector<1x128xi32>
    %19 = arith.addi %8, %18 : vector<1x128xi32>
    %20 = arith.select %17, %19, %8 : vector<1x128xi1>, vector<1x128xi32>
    %c0_i32_4 = arith.constant 0 : i32
    %21 = vector.broadcast %c0_i32_4 : i32 to vector<1x128xi32>
    %22 = arith.cmpi eq, %20, %21 : vector<1x128xi32>
    %c2_i32 = arith.constant 2 : i32
    %23 = vector.broadcast %c2_i32 : i32 to vector<1x128xi32>
    %24 = arith.cmpi eq, %20, %23 : vector<1x128xi32>
    %25 = arith.ori %22, %24 : vector<1x128xi1>
    %26 = arith.select %25, %3, %0 : vector<1x128xi1>, vector<1x128xf32>
    %c0_5 = arith.constant 0 : index
    %c0_6 = arith.constant 0 : index
    %27 = vector.load %arg2[%c0_5, %c0_6] : memref<1x128xf32, #tpu.memory_space<vmem>>, vector<1x128xf32>
    tpu.vector_store %arg2[%c0_5, %c0_6], %26 {strides = array<i32>} : memref<1x128xf32, #tpu.memory_space<vmem>>, vector<1x128xf32>,
    return
  }
  func.func @transform_0(%arg0: i32) -> (i32, i32) {
    %c0_i32 = arith.constant 0 : i32
    %c0_i32_0 = arith.constant 0 : i32
    return %arg0, %c0_i32 : i32, i32
  }
  func.func @transform_1(%arg0: i32) -> (i32, i32) {
    %c0_i32 = arith.constant 0 : i32
    %c0_i32_0 = arith.constant 0 : i32
    return %arg0, %c0_i32 : i32, i32
  }
}

</mosaic_0001>

<bundles_post_ra>
// kernel: tpu_custom_call.1
= control target key start
LH: loop header
LB: loop body
LE: loop exit
PB: predicated region body
PF: predicated region fallthrough
CT: control target
= control target key end

     0   :  { %6 = vsyncpa [#allocation3], 0  ;;  %s131_s0 = inlined_call_operand.hbm [shape: f32[1,128], index: 0, kind: input, shape index: {}]   ;;  %s132_s1 = inlined_call_operand.hbm [shape: f32[1,128], index: 1, kind: output, shape index: {}]  }
   0x1   :  { %7 = vsyncpa [#allocation4], 0  ;;  %s113_s6 = smov [#allocation2]  }
   0x2   :  { %s14_s7 = sshll.u32 %s113_s6, 4  ;;  %s15_s7 = int_to_ptr.vmem [resolvable:$true] %s14_s7 }
   0x3   :  { %s77_s8 = scalar_lea.vmem %s15_s7, 16  ;;  %s81_s9 = scalar_lea.vmem %s15_s7, 32 }
   0x4   :  { %p78_p0 = scmp.ne.s32.totalorder %s15_s7, %s77_s8  ;;  %p82_p1 = scmp.lt.s32.totalorder %s15_s7, %s15_s7 }
   0x5   :  { %p83_p2 = scmp.lt.s32.totalorder %s81_s9, %s77_s8 }
   0x7   :  { %p84_p3 = por %p83_p2, %p82_p1 }
   0x9   :  { %p85_p4 = pnand %p84_p3, %p78_p0 }
   0xb   :  { %88 = shalt.err (!%p85_p4)
}
   0xc   :  { %17 = dma.hbm_to_vmem [thread:$0]  %s131_s0, 16, %s15_s7, [#allocation3]  }
   0xd   :  { %109 = dma.done.wait [#allocation3], 16  }
   0xe   :  { %110 = vsyncadd [#allocation3], 4294967280  ;;  %v21_v0 = vld [vmem:[#allocation2] sm:$0x1]  ;;  %v31_v1 = vlaneseq  ;;  %s114_s12 = smov [#allocation5]  }
   0xf   :  { %67 = vrsqrt.f32 %v21_v0  ;;  %vm24_vm0 = vcmp.eq.f32.partialorder %v21_v0, inf  ;;  %v27_v5 = vand.u32 2147483648, %v21_v0  ;;  %vm26_vm2 = vcmp.eq.f32.partialorder %v21_v0, 0.0  ;;  %s56_s13 = sshll.u32 %s114_s12, 4  ;;  %s57_s13 = int_to_ptr.vmem [resolvable:$true] %s56_s13 }
  0x10   :  { %v32_v2 = vand.u32 127, %v31_v1  ;;  %v29_v7 = vmul.f32 %v21_v0, %v21_v0  ;;  %s89_s0 = scalar_lea.vmem %s57_s13, 16  ;;  %s93_s14 = scalar_lea.vmem %s57_s13, 32 }
  0x11   :  { %p90_p5 = scmp.ne.s32.totalorder %s57_s13, %s89_s0  ;;  %p94_p6 = scmp.lt.s32.totalorder %s57_s13, %s57_s13 }
  0x12   :  { %v37_v3 = vand.u32 3, %v32_v2  ;;  %p95_p7 = scmp.lt.s32.totalorder %s93_s14, %s89_s0 }
  0x14   :  { %vm45_vm1 = vcmp.eq.s32.totalorder %v37_v3, 0  ;;  %vm46_vm3 = vcmp.eq.s32.totalorder %v37_v3, 2  ;;  %p96_p8 = por %p95_p7, %p94_p6 }
  0x15   :  { %vm47_vm4 = vmor %vm45_vm1, %vm46_vm3 }
  0x16   :  { %p97_p9 = pnand %p96_p8, %p90_p5 }
  0x1c   :  { %v68_v4 = vpop.eup %67 }
  0x1d   :  { %v23_v6 = vmul.f32 %v68_v4, %v21_v0 }
  0x1f   :  { %v25_v8 = vsel %vm24_vm0, %v21_v0, %v23_v6 }
  0x20   :  { %v28_v9 = vsel %vm26_vm2, %v27_v5, %v25_v8 }
  0x21   :  { %v30_v10 = vmul.f32 %v29_v7, %v28_v9 }
  0x23   :  { %v48_v11 = vsel %vm47_vm4, %v30_v10, %v21_v0 }
  0x24   :  { %49 = vst [vmem:[#allocation5] sm:$0x1] %v48_v11 }
  0x25   :  { %100 = shalt.err (!%p97_p9)
}
  0x26   :  { %59 = dma.vmem_to_hbm [thread:$0]  %s57_s13, 16, %s132_s1, [#allocation4]  }
  0x27   :  { %111 = dma.done.wait [#allocation4], 16  }
  0x28   :  { %112 = vsyncadd [#allocation4], 4294967280 }
  0x29   :  { %63 = vsyncpa [#allocation3], 1 }
  0x2a   :  { %64 = vsyncpa [#allocation4], 1 }

</bundles_post_ra>
